<compile_context>
chip_gen: v5e
topology: v5e:2x2
jax: 0.10.0
libtpu: 0.0.40
codegen_flags: <defaults>
</compile_context>

<pallas_src>
import functools

import jax
import jax.numpy as jnp
from jax.experimental import pallas as pl
from jax.experimental.pallas import tpu as pltpu


def encoder_kernel(anchor_ref, quad_ref, w1_ref, wh_ref, bh_ref, out_ref):
    """One batch tile of the fully fused Encoder MLP.

    anchor_ref : (tm, anchor_dim)            float32
    quad_ref   : (tm, 1)                     int32, values in [0, cdim)
    w1_ref     : (anchor_dim+cdim+2, hdim)   rows = [W1_anchor ; W1_onehot ; b1 ; 0]
    wh_ref     : (hdim, 2*zdim)              [Wloc | 0.5*Wscale] packed head weights
    bh_ref     : (1, 2*zdim)                 [bloc | 0.5*bscale] packed head biases
    out_ref    : (tm, 2*zdim)                [:, :zdim]  = tanh loc head
                                             [:, zdim:]  = sigmoid scale head + 0.001
    """
    anchor = anchor_ref[...]
    quad = quad_ref[...]                                   # (tm, 1) int32
    tm, anchor_dim = anchor.shape
    cdim = w1_ref.shape[0] - anchor_dim - 2
    zdim = out_ref.shape[1] // 2

    # x = [anchor | one_hot(quadrant) | 1 | 0].  The one-hot is C_Embed's frozen
    # identity embedding; the ones column folds b1 into the matmul below.
    lane_ids = jax.lax.broadcasted_iota(jnp.int32, (tm, cdim), 1)
    onehot = (lane_ids == quad).astype(jnp.float32)        # (tm, cdim)
    x = jnp.concatenate(
        [anchor, onehot,
         jnp.ones((tm, 1), jnp.float32),
         jnp.zeros((tm, 1), jnp.float32)],
        axis=1)                                            # (tm, anchor_dim+cdim+2)

    # Single K=8 matmul for the hidden layer (bias included), then tanh.
    h = jnp.tanh(jnp.dot(x, w1_ref[...], preferred_element_type=jnp.float32))

    # Both heads in one matmul + one tanh.  sigmoid(u) = 0.5*tanh(0.5*u) + 0.5,
    # with the 0.5*u folded into the packed scale-head weights/bias; the scale
    # head also gets the module's +0.001 offset.
    t = jnp.tanh(jnp.dot(h, wh_ref[...], preferred_element_type=jnp.float32)
                 + bh_ref[...])                            # (tm, 2*zdim)
    col = jax.lax.broadcasted_iota(jnp.int32, t.shape, 1)
    out_ref[...] = jnp.where(col >= zdim, 0.5 * t + 0.501, t)


def init_params(key, anchor_dim=2, cdim=4, zdim=10, hdim=128):
    """Deterministic parameter init mimicking nn.Linear's U(-1/sqrt(fan_in), +)."""
    in_dim = anchor_dim + cdim

    def linear(kw, kb, fan_in, fan_out):
        bound = 1.0 / (fan_in ** 0.5)
        w = jax.random.uniform(kw, (fan_in, fan_out), jnp.float32, -bound, bound)
        b = jax.random.uniform(kb, (1, fan_out), jnp.float32, -bound, bound)
        return w, b

    k1, k2, k3, k4, k5, k6 = jax.random.split(key, 6)
    w1, b1 = linear(k1, k2, in_dim, hdim)
    wloc, bloc = linear(k3, k4, hdim, zdim)
    wsc, bsc = linear(k5, k6, hdim, zdim)
    # C_Embed.weight = torch.eye(cdim)[:4], frozen
    c_embed = jnp.eye(cdim, dtype=jnp.float32)[:4]
    return dict(w1=w1, b1=b1, wloc=wloc, bloc=bloc, wsc=wsc, bsc=bsc,
                c_embed=c_embed)


def _num_tensorcores_per_chip():
    """1 for v5e/v6e (single TC); 2 for megacore / dual-TC chips (v4/v5p/v7x)."""
    try:
        kind = jax.devices()[0].device_kind.lower()
    except Exception:
        return 1
    if "v7" in kind or "v4" in kind or "v5p" in kind:
        return 2
    return 1


def _choose_tm(batch, num_cores=None, cap=512):
    """Generation-aware batch tile.

    * 1-TC chips: a single grid step whenever the batch fits (each extra grid
      step is ~0.35us of pure overhead on a kernel this small).
    * dual-TC chips: >=2 "parallel" grid steps only when each shard is >=256
      rows, otherwise fall back to a single step.
    * tm capped at 512 to limit vreg/VMEM pressure (throughput saturates there).
    """
    if num_cores is None:
        num_cores = _num_tensorcores_per_chip()
    if num_cores >= 2 and batch >= 512:
        for tm in (512, 256):
            if batch % tm == 0 and batch // tm >= 2:
                return tm
        return 256
    if batch <= cap:
        return batch            # single step, no padding, no divisibility needed
    for tm in (512, 256, 128):
        if batch % tm == 0:
            return tm           # multi-step without wrapper-side padding
    return cap                  # awkward large batch: pad


@functools.partial(jax.jit, static_argnames=("tm",))
def _dlpg_encode_impl(params, anchor, quadrant, tm):
    B, anchor_dim = anchor.shape
    cdim = params["c_embed"].shape[1]
    hdim = params["w1"].shape[1]
    zdim = params["wloc"].shape[1]

    # Pad batch to a tile multiple only if the chosen tm requires it.
    B_pad = pl.cdiv(B, tm) * tm
    if B_pad != B:
        anchor = jnp.pad(anchor, ((0, B_pad - B), (0, 0)))
        quadrant = jnp.pad(quadrant, (0, B_pad - B))
    quad2d = quadrant.astype(jnp.int32).reshape(B_pad, 1)

    # Layer-1 packing: rows = [W1 ; b1 ; zeros]  -> (anchor_dim+cdim+2, hdim).
    w1_packed = jnp.concatenate(
        [params["w1"], params["b1"], jnp.zeros((1, hdim), jnp.float32)], axis=0)
    # Head packing: scale head pre-scaled by 0.5 for the tanh-based sigmoid.
    w_heads = jnp.concatenate([params["wloc"], 0.5 * params["wsc"]], axis=1)
    b_heads = jnp.concatenate([params["bloc"], 0.5 * params["bsc"]], axis=1)

    rep = lambda i: (0, 0)  # weights/biases replicated across batch tiles
    packed = pl.pallas_call(
        encoder_kernel,
        out_shape=jax.ShapeDtypeStruct((B_pad, 2 * zdim), jnp.float32),
        grid=(B_pad // tm,),
        in_specs=[
            pl.BlockSpec((tm, anchor_dim), lambda i: (i, 0)),         # anchor tile
            pl.BlockSpec((tm, 1), lambda i: (i, 0)),                  # quadrant tile
            pl.BlockSpec((anchor_dim + cdim + 2, hdim), rep),         # packed W1+b1
            pl.BlockSpec((hdim, 2 * zdim), rep),                      # packed heads W
            pl.BlockSpec((1, 2 * zdim), rep),                         # packed heads b
        ],
        out_specs=pl.BlockSpec((tm, 2 * zdim), lambda i: (i, 0)),     # packed output
        compiler_params=pltpu.CompilerParams(
            dimension_semantics=("parallel",)),
    )(anchor, quad2d, w1_packed, w_heads, b_heads)

    return packed[:B, :zdim], packed[:B, zdim:]


def dlpg_encode(params, anchor, quadrant, tm=None):
    """Replicates Encoder.forward(anchor, C_Embed(quadrant)) -> (z_loc, z_scale)."""
    if tm is None:
        tm = _choose_tm(anchor.shape[0])
    return _dlpg_encode_impl(params, anchor, quadrant, tm)


def reference_encode(params, anchor, quadrant):
    """Pure-JAX reference of the same forward (for a correctness check)."""
    c_emb = params["c_embed"][quadrant]
    x = jnp.concatenate([anchor, c_emb], axis=1)
    h = jnp.tanh(x @ params["w1"] + params["b1"])
    zloc = jnp.tanh(h @ params["wloc"] + params["bloc"])
    zscale = jax.nn.sigmoid(h @ params["wsc"] + params["bsc"]) + 0.001
    return zloc, zscale


# TODO(synk): set_Decoder / forward / decode / exploit are abstract
# (NotImplementedError) in DLPG_ABC_, and the Adam optimizer / MuJoCo rollout
# have no Pallas equivalent; only the concrete encoder path is implemented and
# the Normal distribution is returned as its (z_loc, z_scale) parameters.

if __name__ == "__main__":
    # Shapes consistent with the module defaults: anchor_dim=2, cdim=4,
    # zdim=10, hdim=[128], batch=128 (the Encoder.forward default batch).
    B, ANCHOR_DIM, CDIM, ZDIM, HDIM = 128, 2, 4, 10, 128

    key = jax.random.PRNGKey(0)
    kp, ka, kq = jax.random.split(key, 3)

    params = init_params(kp, anchor_dim=ANCHOR_DIM, cdim=CDIM, zdim=ZDIM, hdim=HDIM)
    anchor = jax.random.normal(ka, (B, ANCHOR_DIM), dtype=jnp.float32)
    quadrant = jax.random.randint(kq, (B,), 0, 4, dtype=jnp.int32)

    z_loc, z_scale = dlpg_encode(params, anchor, quadrant)
    jax.block_until_ready((z_loc, z_scale))

    ref_loc, ref_scale = reference_encode(params, anchor, quadrant)
    assert z_loc.shape == (B, ZDIM) and z_scale.shape == (B, ZDIM)
    assert jnp.allclose(z_loc, ref_loc, atol=1e-5, rtol=1e-5)
    assert jnp.allclose(z_scale, ref_scale, atol=1e-5, rtol=1e-5)
    assert bool(jnp.all(z_scale > 0.0))  # valid Normal scale

    # Non-tile-divisible batch: single-step path, tm == B, no padding needed.
    B2 = 50
    anchor2 = jax.random.normal(jax.random.PRNGKey(1), (B2, ANCHOR_DIM), jnp.float32)
    quadrant2 = jax.random.randint(jax.random.PRNGKey(2), (B2,), 0, 4, jnp.int32)
    zl2, zs2 = dlpg_encode(params, anchor2, quadrant2)
    jax.block_until_ready((zl2, zs2))
    rl2, rs2 = reference_encode(params, anchor2, quadrant2)
    assert zl2.shape == (B2, ZDIM) and zs2.shape == (B2, ZDIM)
    assert jnp.allclose(zl2, rl2, atol=1e-5, rtol=1e-5)
    assert jnp.allclose(zs2, rs2, atol=1e-5, rtol=1e-5)

    # Explicit small tile to exercise the multi-step grid + padding path.
    zl3, zs3 = dlpg_encode(params, anchor2, quadrant2, tm=32)
    jax.block_until_ready((zl3, zs3))
    assert jnp.allclose(zl3, rl2, atol=1e-5, rtol=1e-5)
    assert jnp.allclose(zs3, rs2, atol=1e-5, rtol=1e-5)

    print("KERNEL_OK")
</pallas_src>

<mosaic_0001>
module attributes {stable_mosaic.version = 11 : i64} {
  func.func @encoder_kernel(%arg0: i32, %arg1: memref<128x2xf32, #tpu.memory_space<vmem>>, %arg2: memref<128x1xi32, #tpu.memory_space<vmem>>, %arg3: memref<8x128xf32, #tpu.memory_space<vmem>>, %arg4: memref<128x20xf32, #tpu.memory_space<vmem>>, %arg5: memref<1x20xf32, #tpu.memory_space<vmem>>, %arg6: memref<128x20xf32, #tpu.memory_space<vmem>>) attributes {dimension_semantics = [#tpu.dimension_semantics<parallel>], iteration_bounds = array<i64: 1>, scalar_prefetch = 0 : i64, scratch_operands = 0 : i64, tpu.core_type = #tpu.core_type<tc>, window_params = [{transform_indices = @transform_0, window_bounds = array<i64: 128, 2>}, {transform_indices = @transform_1, window_bounds = array<i64: 128, 1>}, {pipeline_mode = #tpu.pipeline_mode<synchronous>, transform_indices = @transform_2, window_bounds = array<i64: 8, 128>}, {pipeline_mode = #tpu.pipeline_mode<synchronous>, transform_indices = @transform_3, window_bounds = array<i64: 128, 20>}, {pipeline_mode = #tpu.pipeline_mode<synchronous>, transform_indices = @transform_4, window_bounds = array<i64: 1, 20>}, {transform_indices = @transform_5, window_bounds = array<i64: 128, 20>}]} {
    %c0 = arith.constant 0 : index
    %c0_0 = arith.constant 0 : index
    %0 = vector.load %arg1[%c0, %c0_0] : memref<128x2xf32, #tpu.memory_space<vmem>>, vector<128x2xf32>
    %c0_1 = arith.constant 0 : index
    %c0_2 = arith.constant 0 : index
    %1 = vector.load %arg2[%c0_1, %c0_2] : memref<128x1xi32, #tpu.memory_space<vmem>>, vector<128x1xi32>
    %2 = tpu.iota {dimensions = array<i32: 1>} : vector<128x4xi32>
    %3 = vector.broadcast %1 : vector<128x1xi32> to vector<128x4xi32>
    %4 = arith.cmpi eq, %2, %3 : vector<128x4xi32>
    %5 = arith.extui %4 : vector<128x4xi1> to vector<128x4xi32>
    %6 = arith.sitofp %5 : vector<128x4xi32> to vector<128x4xf32>
    %cst = arith.constant 1.000000e+00 : f32
    %7 = vector.broadcast %cst : f32 to vector<128x1xf32>
    %cst_3 = arith.constant 0.000000e+00 : f32
    %8 = vector.broadcast %cst_3 : f32 to vector<128x1xf32>
    %9 = tpu.concatenate %0, %6, %7, %8 in 1 : vector<128x2xf32>, vector<128x4xf32>, vector<128x1xf32>, vector<128x1xf32> -> vector<128x8xf32>
    %c0_4 = arith.constant 0 : index
    %c0_5 = arith.constant 0 : index
    %10 = vector.load %arg3[%c0_4, %c0_5] : memref<8x128xf32, #tpu.memory_space<vmem>>, vector<8x128xf32>
    %cst_6 = arith.constant dense<0.000000e+00> : vector<128x128xf32>
    %11 = tpu.matmul %9, %10, %cst_6 {dimension_numbers = #tpu.dot_dimension_numbers<[1], [0], [0], [1], [0, 0, 1, 1], [], []>} : vector<128x8xf32>, vector<8x128xf32>, vector<128x128xf32> -> vector<128x128xf32>
    %12 = math.tanh %11 : vector<128x128xf32>
    %c0_7 = arith.constant 0 : index
    %c0_8 = arith.constant 0 : index
    %13 = vector.load %arg4[%c0_7, %c0_8] : memref<128x20xf32, #tpu.memory_space<vmem>>, vector<128x20xf32>
    %cst_9 = arith.constant dense<0.000000e+00> : vector<128x20xf32>
    %14 = tpu.matmul %12, %13, %cst_9 {dimension_numbers = #tpu.dot_dimension_numbers<[1], [0], [0], [1], [0, 0, 1, 1], [], []>} : vector<128x128xf32>, vector<128x20xf32>, vector<128x20xf32> -> vector<128x20xf32>
    %c0_10 = arith.constant 0 : index
    %c0_11 = arith.constant 0 : index
    %15 = vector.load %arg5[%c0_10, %c0_11] : memref<1x20xf32, #tpu.memory_space<vmem>>, vector<1x20xf32>
    %16 = vector.broadcast %15 : vector<1x20xf32> to vector<128x20xf32>
    %17 = arith.addf %14, %16 : vector<128x20xf32>
    %18 = math.tanh %17 : vector<128x20xf32>
    %19 = tpu.iota {dimensions = array<i32: 1>} : vector<128x20xi32>
    %c10_i32 = arith.constant 10 : i32
    %20 = vector.broadcast %c10_i32 : i32 to vector<128x20xi32>
    %21 = arith.cmpi sge, %19, %20 : vector<128x20xi32>
    %cst_12 = arith.constant 5.000000e-01 : f32
    %22 = vector.broadcast %cst_12 : f32 to vector<128x20xf32>
    %23 = arith.mulf %22, %18 : vector<128x20xf32>
    %cst_13 = arith.constant 5.010000e-01 : f32
    %24 = vector.broadcast %cst_13 : f32 to vector<128x20xf32>
    %25 = arith.addf %23, %24 : vector<128x20xf32>
    %26 = arith.select %21, %25, %18 : vector<128x20xi1>, vector<128x20xf32>
    %c0_14 = arith.constant 0 : index
    %c0_15 = arith.constant 0 : index
    %27 = vector.load %arg6[%c0_14, %c0_15] : memref<128x20xf32, #tpu.memory_space<vmem>>, vector<128x20xf32>
    tpu.vector_store %arg6[%c0_14, %c0_15], %26 {strides = array<i32>} : memref<128x20xf32, #tpu.memory_space<vmem>>, vector<128x20xf32>,
    return
  }
  func.func @transform_0(%arg0: i32) -> (i32, i32) {
    %c0_i32 = arith.constant 0 : i32
    %c0_i32_0 = arith.constant 0 : i32
    return %arg0, %c0_i32 : i32, i32
  }
  func.func @transform_1(%arg0: i32) -> (i32, i32) {
    %c0_i32 = arith.constant 0 : i32
    %c0_i32_0 = arith.constant 0 : i32
    return %arg0, %c0_i32 : i32, i32
  }
  func.func @transform_2(%arg0: i32) -> (i32, i32) {
    %c0_i32 = arith.constant 0 : i32
    %c0_i32_0 = arith.constant 0 : i32
    %c0_i32_1 = arith.constant 0 : i32
    return %c0_i32, %c0_i32_0 : i32, i32
  }
  func.func @transform_3(%arg0: i32) -> (i32, i32) {
    %c0_i32 = arith.constant 0 : i32
    %c0_i32_0 = arith.constant 0 : i32
    %c0_i32_1 = arith.constant 0 : i32
    return %c0_i32, %c0_i32_0 : i32, i32
  }
  func.func @transform_4(%arg0: i32) -> (i32, i32) {
    %c0_i32 = arith.constant 0 : i32
    %c0_i32_0 = arith.constant 0 : i32
    %c0_i32_1 = arith.constant 0 : i32
    return %c0_i32, %c0_i32_0 : i32, i32
  }
  func.func @transform_5(%arg0: i32) -> (i32, i32) {
    %c0_i32 = arith.constant 0 : i32
    %c0_i32_0 = arith.constant 0 : i32
    return %arg0, %c0_i32 : i32, i32
  }
}

</mosaic_0001>

<bundles_post_ra>
// kernel: _dlpg_encode_impl.1
= control target key start
LH: loop header
LB: loop body
LE: loop exit
PB: predicated region body
PF: predicated region fallthrough
CT: control target
= control target key end

     0   :  { %v723_v0 = vmov 0   ;;  %v52_v12 = vlaneseq  ;;  %v724_v15 = vmov 0.0   ;;  %s725_s13 = smov 2   ;;  %vm214_vm6 = vcmask 15360   ;;  %s1131_s1 = inlined_call_operand.vmem [shape: s32[128,1], index: 1, kind: input, shape index: {}]   ;;  %s1132_s2 = inlined_call_operand.vmem [shape: f32[8,128], index: 2, kind: input, shape index: {}]   ;;  %s1133_s0 = inlined_call_operand.vmem [shape: f32[128,2], index: 0, kind: input, shape index: {}]   ;;  %s1134_s3 = inlined_call_operand.vmem [shape: f32[128,20], index: 3, kind: input, shape index: {}]   ;;  %s1135_s4 = inlined_call_operand.vmem [shape: f32[1,20], index: 4, kind: input, shape index: {}]   ;;  %s1136_s5 = inlined_call_operand.vmem [shape: f32[128,20], index: 5, kind: output, shape index: {}]  }
   0x1   :  { %637 = vset.pattern.permute.xlu2 %v723_v0  ;;  %635 = vset.pattern.permute.xlu0 %v723_v0  ;;  %v40_v1 = vld [vmem:[%s1131_s1 + $0x20] sm:$0xff]  ;;  %v38_v3 = vld [vmem:[%s1131_s1 + $0x10] sm:$0xff]  ;;  %v41_v4 = vld [vmem:[%s1131_s1 + $0x28] sm:$0xff]  ;;  %vm231_vm7 = vcmask 48128   ;;  %vm266_vm8 = vcmask 64512   ;;  %vm248_vm9 = vcmask 56320  }
   0x2   :  { %v36_v2 = vld [vmem:[%s1131_s1] sm:$0xff]  ;;  %67 = vperm.xlu2 %637, %v40_v1   ;;  %636 = vset.pattern.permute.xlu1 %v723_v0  ;;  %v37_v5 = vld [vmem:[%s1131_s1 + $0x8] sm:$0xff]  ;;  %v39_v6 = vld [vmem:[%s1131_s1 + $0x18] sm:$0xff]  ;;  %v786_v13 = vand.u32 127, %v52_v12 }
   0x3   :  { %55 = vperm.xlu0 %635, %v36_v2   ;;  %61 = vperm.xlu1 %636, %v38_v3   ;;  %v42_v7 = vld [vmem:[%s1131_s1 + $0x30] sm:$0xff]  ;;  %v43_v8 = vld [vmem:[%s1131_s1 + $0x38] sm:$0xff]  ;;  %v44_v9 = vld [vmem:[%s1131_s1 + $0x40] sm:$0xff] }
   0x4   :  { %v45_v10 = vld [vmem:[%s1131_s1 + $0x48] sm:$0xff]  ;;  %v51_v17 = vld [vmem:[%s1131_s1 + $0x78] sm:$0xff]  ;;  %v46_v21 = vld [vmem:[%s1131_s1 + $0x50] sm:$0xff] }
   0x5   :  { %v47_v25 = vld [vmem:[%s1131_s1 + $0x58] sm:$0xff]  ;;  %v48_v28 = vld [vmem:[%s1131_s1 + $0x60] sm:$0xff]  ;;  %v49_v30 = vld [vmem:[%s1131_s1 + $0x68] sm:$0xff] }
   0x6   :  { %v50_v31 = vld [vmem:[%s1131_s1 + $0x70] sm:$0xff]  ;;  %v265_v32 = vld [vmem:[%s1132_s2] sm:$0xff]  ;;  %v21_v41 = vld [vmem:[%s1133_s0 + $0x8] sm:$0xff] }
   0x7   :  { %330 = vmatpush.msra.mxu0 %v265_v32  ;;  %599 = vmatpush.msra.mxu3 %v265_v32  ;;  %v20_v37 = vld [vmem:[%s1133_s0] sm:$0xff]  ;;  %v22_v46 = vld [vmem:[%s1133_s0 + $0x10] sm:$0xff]  ;;  %v411_v56 = vld [vmem:[%s1134_s3 + $0x78] sm:$0xff] }
   0x8   :  { %v410_v57 = vld [vmem:[%s1134_s3 + $0x70] sm:$0xff]  ;;  %416 = vmatpush.msra.mxu1 %v411_v56  ;;  %v409_v59 = vld [vmem:[%s1134_s3 + $0x68] sm:$0xff]  ;;  %600 = vmatpush.msra.mxu2 %v411_v56  ;;  %v23_v60 = vld [vmem:[%s1133_s0 + $0x18] sm:$0xff] }
   0x9   :  { %601 = vmatpush.msrb.mxu3 %v411_v56  ;;  %v403_v32 = vld [vmem:[%s1134_s3 + $0x38] sm:$0xff] }
   0xa   :  { %70 = vperm.xlu2 %637, %v41_v4   ;;  %417 = vmatpush.msra.mxu1 %v410_v57 }
   0xb   :  { %58 = vperm.xlu0 %635, %v37_v5   ;;  %64 = vperm.xlu1 %636, %v39_v6  }
   0xc   :  { %602 = vmatpush.msra.mxu2 %v410_v57  ;;  %603 = vmatpush.msrb.mxu3 %v410_v57 }
   0xd   :  { %418 = vmatpush.msra.mxu1 %v409_v59 }
   0xe   :  { %604 = vmatpush.msra.mxu2 %v409_v59  ;;  %605 = vmatpush.msrb.mxu3 %v409_v59 }
  0x13   :  { %73 = vperm.xlu1 %636, %v42_v7  }
  0x1b   :  { %76 = vperm.xlu1 %636, %v43_v8  }
  0x23   :  { %79 = vperm.xlu1 %636, %v44_v9   ;;  %v24_v9 = vld [vmem:[%s1133_s0 + $0x20] sm:$0xff] }
  0x2b   :  { %82 = vperm.xlu1 %636, %v45_v10  }
  0x5c   :  { %v68_v11 = vpop.permute.xlu2 %67 }
  0x5d   :  { %vm106_vm5 = vcmp.eq.s32.totalorder %v786_v13, %v68_v11 }
  0x5e   :  { %v571_v29 = vsel %vm106_vm5, 1.0, %v724_v15  ;;  %vm546_vm5 = vcmask 162816  }
  0x64   :  { %v71_v14 = vpop.permute.xlu2 %70 }
  0x65   :  { %vm107_vm0 = vcmp.eq.s32.totalorder %v786_v13, %v71_v14 }
  0x66   :  { %v572_v16 = vsel %vm107_vm0, 1.0, %v724_v15 }
  0x67   :  { %176 = vrot.lane.b32.xlu1 %v572_v16, %s725_s13 }
  0x6f   :  { %100 = vperm.xlu1 %636, %v51_v17  }
  0x75   :  { %v56_v18 = vpop.permute.xlu0 %55  ;;  %v62_v22 = vpop.permute.xlu1 %61 }
  0x76   :  { %vm102_vm1 = vcmp.eq.s32.totalorder %v786_v13, %v56_v18  ;;  %vm104_vm3 = vcmp.eq.s32.totalorder %v786_v13, %v62_v22 }
  0x77   :  { %v567_v19 = vsel %vm102_vm1, 1.0, %v724_v15  ;;  %v569_v24 = vsel %vm104_vm3, 1.0, %v724_v15 }
  0x78   :  { %166 = vrot.lane.b32.xlu0 %v567_v19, %s725_s13 }
  0x7d   :  { %v59_v20 = vpop.permute.xlu0 %58  ;;  %v65_v26 = vpop.permute.xlu1 %64 }
  0x7e   :  { %vm103_vm2 = vcmp.eq.s32.totalorder %v786_v13, %v59_v20  ;;  %vm105_vm4 = vcmp.eq.s32.totalorder %v786_v13, %v65_v26  ;;  %v25_v20 = vld [vmem:[%s1133_s0 + $0x28] sm:$0xff] }
  0x7f   :  { %v568_v23 = vsel %vm103_vm2, 1.0, %v724_v15  ;;  %v570_v27 = vsel %vm105_vm4, 1.0, %v724_v15  ;;  %vm497_vm4 = vcmp.ge.s32.totalorder %v786_v13, 10 }
  0x80   :  { %85 = vperm.xlu0 %635, %v46_v21   ;;  %168 = vrot.lane.b32.xlu2 %v568_v23, %s725_s13 }
  0x85   :  { %v74_v33 = vpop.permute.xlu1 %73 }
  0x86   :  { %vm108_vm10 = vcmp.eq.s32.totalorder %v786_v13, %v74_v33  ;;  %v402_v33 = vld [vmem:[%s1134_s3 + $0x30] sm:$0xff] }
  0x87   :  { %v573_v49 = vsel %vm108_vm10, 1.0, %v724_v15 }
  0x88   :  { %88 = vperm.xlu0 %635, %v47_v25   ;;  %170 = vrot.lane.b32.xlu2 %v569_v24, %s725_s13 }
  0x8d   :  { %v77_v35 = vpop.permute.xlu1 %76 }
  0x8e   :  { %vm109_vm12 = vcmp.eq.s32.totalorder %v786_v13, %v77_v35  ;;  %v400_v35 = vld [vmem:[%s1134_s3 + $0x20] sm:$0xff] }
  0x8f   :  { %v574_v63 = vsel %vm109_vm12, 1.0, %v724_v15 }
  0x90   :  { %91 = vperm.xlu0 %635, %v48_v28   ;;  %172 = vrot.lane.b32.xlu2 %v570_v27, %s725_s13  ;;  %v408_v28 = vld [vmem:[%s1134_s3 + $0x60] sm:$0xff] }
  0x91   :  { %419 = vmatpush.msra.mxu1 %v408_v28  ;;  %606 = vmatpush.msra.mxu2 %v408_v28 }
  0x92   :  { %607 = vmatpush.msrb.mxu3 %v408_v28 }
  0x95   :  { %v80_v40 = vpop.permute.xlu1 %79 }
  0x96   :  { %vm110_vm14 = vcmp.eq.s32.totalorder %v786_v13, %v80_v40 }
  0x97   :  { %v575_v8 = vsel %vm110_vm14, 1.0, %v724_v15 }
  0x98   :  { %94 = vperm.xlu0 %635, %v49_v30   ;;  %174 = vrot.lane.b32.xlu2 %v571_v29, %s725_s13  ;;  %v406_v29 = vld [vmem:[%s1134_s3 + $0x50] sm:$0xff]  ;;  %v405_v30 = vld [vmem:[%s1134_s3 + $0x48] sm:$0xff] }
  0x9d   :  { %v83_v54 = vpop.permute.xlu1 %82 }
  0x9e   :  { %vm111_vm1 = vcmp.eq.s32.totalorder %v786_v13, %v83_v54  ;;  %v31_v54 = vld [vmem:[%s1133_s0 + $0x58] sm:$0xff] }
  0x9f   :  { %v576_v19 = vsel %vm111_vm1, 1.0, %v724_v15 }
  0xa0   :  { %97 = vperm.xlu2 %637, %v50_v31   ;;  %v404_v31 = vld [vmem:[%s1134_s3 + $0x40] sm:$0xff] }
  0xd9   :  { %v177_v3 = vpop.permute.xlu1 %176 }
  0xda   :  { %v169_v34 = vpop.permute.xlu2 %168  ;;  %v220_v25 = vsel %vm214_vm6, %v25_v20, %v177_v3  ;;  %v32_v3 = vld [vmem:[%s1133_s0 + $0x60] sm:$0xff] }
  0xdb   :  { %v216_v45 = vsel %vm214_vm6, %v21_v41, %v169_v34  ;;  %v237_v26 = vsel %vm231_vm7, %v220_v25, 1.0  ;;  %v401_v34 = vld [vmem:[%s1134_s3 + $0x28] sm:$0xff] }
  0xdc   :  { %v233_v48 = vsel %vm231_vm7, %v216_v45, 1.0  ;;  %v254_v27 = vsel %vm248_vm9, %v237_v26, 0.0  ;;  %v34_v26 = vld [vmem:[%s1133_s0 + $0x70] sm:$0xff] }
  0xdd   :  { %v250_v53 = vsel %vm248_vm9, %v233_v48, 0.0 }
  0xe1   :  { %v101_v16 = vpop.permute.xlu1 %100 }
  0xe2   :  { %v171_v36 = vpop.permute.xlu2 %170  ;;  %vm117_vm2 = vcmp.eq.s32.totalorder %v786_v13, %v101_v16 }
  0xe3   :  { %v217_v51 = vsel %vm214_vm6, %v22_v46, %v171_v36  ;;  %v582_v24 = vsel %vm117_vm2, 1.0, %v724_v15  ;;  %v399_v36 = vld [vmem:[%s1134_s3 + $0x18] sm:$0xff] }
  0xe4   :  { %v234_v58 = vsel %vm231_vm7, %v217_v51, 1.0 }
  0xe5   :  { %v251_v62 = vsel %vm248_vm9, %v234_v58, 0.0 }
  0xea   :  { %v167_v38 = vpop.permute.xlu0 %166  ;;  %v173_v42 = vpop.permute.xlu2 %172 }
  0xeb   :  { %v215_v39 = vsel %vm214_vm6, %v20_v37, %v167_v38  ;;  %v218_v1 = vsel %vm214_vm6, %v23_v60, %v173_v42  ;;  %v398_v37 = vld [vmem:[%s1134_s3 + $0x10] sm:$0xff]  ;;  %v397_v38 = vld [vmem:[%s1134_s3 + $0x8] sm:$0xff] }
  0xec   :  { %v232_v43 = vsel %vm231_vm7, %v215_v39, 1.0  ;;  %v235_v5 = vsel %vm231_vm7, %v218_v1, 1.0  ;;  %v396_v39 = vld [vmem:[%s1134_s3] sm:$0xff]  ;;  %v26_v42 = vld [vmem:[%s1133_s0 + $0x30] sm:$0xff] }
  0xed   :  { %v249_v44 = vsel %vm248_vm9, %v232_v43, 0.0  ;;  %v252_v7 = vsel %vm248_vm9, %v235_v5, 0.0  ;;  %v30_v43 = vld [vmem:[%s1133_s0 + $0x50] sm:$0xff] }
  0xee   :  { %583 = vmatmul.msk.f32.vlgmr.msra.gmra.mxu0 %vm266_vm8, %v249_v44 }
  0xf2   :  { %v86_v47 = vpop.permute.xlu0 %85  ;;  %v175_v55 = vpop.permute.xlu2 %174 }
  0xf3   :  { %vm112_vm11 = vcmp.eq.s32.totalorder %v786_v13, %v86_v47  ;;  %v219_v14 = vsel %vm214_vm6, %v24_v9, %v175_v55 }
  0xf4   :  { %v577_v50 = vsel %vm112_vm11, 1.0, %v724_v15  ;;  %v236_v18 = vsel %vm231_vm7, %v219_v14, 1.0 }
  0xf5   :  { %v638_v52 = vpack.i.bf16 %v577_v50, %v573_v49  ;;  %v253_v23 = vsel %vm248_vm9, %v236_v18, 0.0  ;;  %v33_v18 = vld [vmem:[%s1133_s0 + $0x68] sm:$0xff] }
  0xf6   :  { %584 = vmatmul.msk.f32.gmra.mxu0 %vm266_vm8, %v250_v53  ;;  %v27_v53 = vld [vmem:[%s1133_s0 + $0x38] sm:$0xff] }
  0xf7   :  { %639 = vrot.lane.b32.xlu0 %v638_v52, %s725_s13 }
  0xfa   :  { %v89_v61 = vpop.permute.xlu0 %88  ;;  %v98_v4 = vpop.permute.xlu2 %97 }
  0xfb   :  { %vm113_vm13 = vcmp.eq.s32.totalorder %v786_v13, %v89_v61  ;;  %vm116_vm15 = vcmp.eq.s32.totalorder %v786_v13, %v98_v4 }
  0xfc   :  { %v578_v0 = vsel %vm113_vm13, 1.0, %v724_v15  ;;  %v581_v12 = vsel %vm116_vm15, 1.0, %v724_v15 }
  0xfd   :  { %v643_v2 = vpack.i.bf16 %v578_v0, %v574_v63 }
  0xfe   :  { %585 = vmatmul.msk.f32.gmra.mxu0 %vm266_vm8, %v251_v62 }
  0xff   :  { %644 = vrot.lane.b32.xlu2 %v643_v2, %s725_s13  ;;  %v28_v2 = vld [vmem:[%s1133_s0 + $0x40] sm:$0xff] }
 0x102   :  { %v92_v6 = vpop.permute.xlu0 %91 }
 0x103   :  { %vm114_vm0 = vcmp.eq.s32.totalorder %v786_v13, %v92_v6 }
 0x104   :  { %v579_v10 = vsel %vm114_vm0, 1.0, %v724_v15 }
 0x105   :  { %v648_v11 = vpack.i.bf16 %v579_v10, %v575_v8 }
 0x106   :  { %586 = vmatmul.msk.f32.gmra.mxu0 %vm266_vm8, %v252_v7 }
 0x107   :  { %194 = vrot.lane.b32.xlu2 %v581_v12, %s725_s13  ;;  %649 = vrot.lane.b32.xlu0 %v648_v11, %s725_s13 }
 0x10a   :  { %v95_v17 = vpop.permute.xlu0 %94 }
 0x10b   :  { %vm115_vm3 = vcmp.eq.s32.totalorder %v786_v13, %v95_v17  ;;  %v29_v17 = vld [vmem:[%s1133_s0 + $0x48] sm:$0xff] }
 0x10c   :  { %v580_v21 = vsel %vm115_vm3, 1.0, %v724_v15  ;;  %v407_v15 = vld [vmem:[%s1134_s3 + $0x58] sm:$0xff] }
 0x10d   :  { %v653_v22 = vpack.i.bf16 %v580_v21, %v576_v19  ;;  %420 = vmatpush.msra.mxu1 %v407_v15  ;;  %608 = vmatpush.msra.mxu2 %v407_v15 }
 0x10e   :  { %587 = vmatmul.msk.f32.gmra.mxu0 %vm266_vm8, %v253_v23  ;;  %609 = vmatpush.msrb.mxu3 %v407_v15 }
 0x10f   :  { %196 = vrot.lane.b32.xlu0 %v582_v24, %s725_s13  ;;  %654 = vrot.lane.b32.xlu1 %v653_v22, %s725_s13 }
 0x110   :  { %421 = vmatpush.msra.mxu1 %v406_v29  ;;  %610 = vmatpush.msra.mxu2 %v406_v29 }
 0x111   :  { %611 = vmatpush.msrb.mxu3 %v406_v29 }
 0x112   :  { %422 = vmatpush.msra.mxu1 %v405_v30  ;;  %612 = vmatpush.msra.mxu2 %v405_v30 }
 0x113   :  { %613 = vmatpush.msrb.mxu3 %v405_v30 }
 0x114   :  { %423 = vmatpush.msra.mxu1 %v404_v31  ;;  %614 = vmatpush.msra.mxu2 %v404_v31 }
 0x115   :  { %615 = vmatpush.msrb.mxu3 %v404_v31 }
 0x116   :  { %588 = vmatmul.msk.f32.gmra.mxu0 %vm266_vm8, %v254_v27  ;;  %424 = vmatpush.msra.mxu1 %v403_v32 }
 0x117   :  { %616 = vmatpush.msra.mxu2 %v403_v32  ;;  %617 = vmatpush.msrb.mxu3 %v403_v32 }
 0x118   :  { %425 = vmatpush.msra.mxu1 %v402_v33 }
 0x119   :  { %618 = vmatpush.msra.mxu2 %v402_v33  ;;  %619 = vmatpush.msrb.mxu3 %v402_v33 }
 0x11a   :  { %426 = vmatpush.msra.mxu1 %v401_v34 }
 0x11b   :  { %620 = vmatpush.msra.mxu2 %v401_v34  ;;  %621 = vmatpush.msrb.mxu3 %v401_v34 }
 0x11c   :  { %427 = vmatpush.msra.mxu1 %v400_v35 }
 0x11d   :  { %622 = vmatpush.msra.mxu2 %v400_v35  ;;  %623 = vmatpush.msrb.mxu3 %v400_v35  ;;  %v35_v35 = vld [vmem:[%s1133_s0 + $0x78] sm:$0xff] }
 0x11e   :  { %428 = vmatpush.msra.mxu1 %v399_v36 }
 0x11f   :  { %624 = vmatpush.msra.mxu2 %v399_v36  ;;  %625 = vmatpush.msrb.mxu3 %v399_v36 }
 0x120   :  { %429 = vmatpush.msra.mxu1 %v398_v37 }
 0x121   :  { %626 = vmatpush.msra.mxu2 %v398_v37  ;;  %627 = vmatpush.msrb.mxu3 %v398_v37 }
 0x122   :  { %430 = vmatpush.msra.mxu1 %v397_v38 }
 0x123   :  { %628 = vmatpush.msra.mxu2 %v397_v38  ;;  %629 = vmatpush.msrb.mxu3 %v397_v38 }
 0x124   :  { %431 = vmatpush.msra.mxu1 %v396_v39 }
 0x125   :  { %630 = vmatpush.msra.mxu2 %v396_v39  ;;  %631 = vmatpush.msrb.mxu3 %v396_v39 }
 0x159   :  { %v645_v40 = vpop.permute.xlu2 %644 }
 0x15a   :  { %v647_v46 = vunpack.i.h.bf16 %v645_v40  ;;  %v646_v48 = vunpack.i.l.bf16 %v645_v40 }
 0x15c   :  { %v222_v57 = vsel %vm214_vm6, %v27_v53, %v646_v48  ;;  %v226_v58 = vsel %vm214_vm6, %v31_v54, %v647_v46 }
 0x15d   :  { %v239_v61 = vsel %vm231_vm7, %v222_v57, 1.0  ;;  %v243_v62 = vsel %vm231_vm7, %v226_v58, 1.0 }
 0x15e   :  { %v256_v63 = vsel %vm248_vm9, %v239_v61, 0.0  ;;  %v260_v0 = vsel %vm248_vm9, %v243_v62, 0.0 }
 0x161   :  { %v195_v25 = vpop.permute.xlu2 %194 }
 0x162   :  { %v229_v30 = vsel %vm214_vm6, %v34_v26, %v195_v25 }
 0x163   :  { %v246_v33 = vsel %vm231_vm7, %v229_v30, 1.0 }
 0x164   :  { %v263_v36 = vsel %vm248_vm9, %v246_v33, 0.0 }
 0x169   :  { %v640_v41 = vpop.permute.xlu0 %639 }
 0x16a   :  { %v642_v44 = vunpack.i.h.bf16 %v640_v41  ;;  %v641_v45 = vunpack.i.l.bf16 %v640_v41 }
 0x16b   :  { %v332_v47 = vpop.f32.mrf.mxu0 }
 0x16c   :  { %659 = vtanh.f32 %v332_v47  ;;  %v221_v49 = vsel %vm214_vm6, %v26_v42, %v641_v45  ;;  %v225_v50 = vsel %vm214_vm6, %v30_v43, %v642_v44  ;;  %v1016_v44 = vld [vmem:[%s1135_s4] ss:$0 sm:$0xff] }
 0x16d   :  { %v238_v51 = vsel %vm231_vm7, %v221_v49, 1.0  ;;  %v242_v52 = vsel %vm231_vm7, %v225_v50, 1.0 }
 0x16e   :  { %v255_v55 = vsel %vm248_vm9, %v238_v51, 0.0  ;;  %v259_v56 = vsel %vm248_vm9, %v242_v52, 0.0 }
 0x16f   :  { %589 = vmatmul.msk.f32.gmra.mxu0 %vm266_vm8, %v255_v55  ;;  %593 = vmatmul.msk.f32.vlgmr.msra.gmra.mxu3 %vm266_vm8, %v259_v56 }
 0x172   :  { %v660_v59 = vpop.eup %659 }
 0x173   :  { %v335_v60 = vpop.f32.mrf.mxu0  ;;  %432 = vmatmul.f32.vlgmr.msra.gmra.mxu1 %v660_v59 }
 0x174   :  { %661 = vtanh.f32 %v335_v60 }
 0x177   :  { %590 = vmatmul.msk.f32.gmra.mxu0 %vm266_vm8, %v256_v63  ;;  %594 = vmatmul.msk.f32.gmra.mxu3 %vm266_vm8, %v260_v0 }
 0x179   :  { %v650_v1 = vpop.permute.xlu0 %649 }
 0x17a   :  { %v662_v4 = vpop.eup %661  ;;  %v652_v5 = vunpack.i.h.bf16 %v650_v1  ;;  %v651_v6 = vunpack.i.l.bf16 %v650_v1 }
 0x17b   :  { %v338_v7 = vpop.f32.mrf.mxu0  ;;  %435 = vmatmul.f32.gmra.mxu1 %v662_v4 }
 0x17c   :  { %663 = vtanh.f32 %v338_v7  ;;  %v223_v8 = vsel %vm214_vm6, %v28_v2, %v651_v6  ;;  %v227_v9 = vsel %vm214_vm6, %v32_v3, %v652_v5 }
 0x17d   :  { %v240_v10 = vsel %vm231_vm7, %v223_v8, 1.0  ;;  %v244_v11 = vsel %vm231_vm7, %v227_v9, 1.0 }
 0x17e   :  { %v257_v12 = vsel %vm248_vm9, %v240_v10, 0.0  ;;  %v261_v14 = vsel %vm248_vm9, %v244_v11, 0.0 }
 0x17f   :  { %591 = vmatmul.msk.f32.gmra.mxu0 %vm266_vm8, %v257_v12  ;;  %595 = vmatmul.msk.f32.gmra.mxu3 %vm266_vm8, %v261_v14 }
 0x181   :  { %v655_v16 = vpop.permute.xlu1 %654  ;;  %v197_v34 = vpop.permute.xlu0 %196 }
 0x182   :  { %v664_v19 = vpop.eup %663  ;;  %v657_v20 = vunpack.i.h.bf16 %v655_v16  ;;  %v656_v21 = vunpack.i.l.bf16 %v655_v16  ;;  %v230_v37 = vsel %vm214_vm6, %v35_v35, %v197_v34 }
 0x183   :  { %v341_v22 = vpop.f32.mrf.mxu0  ;;  %438 = vmatmul.f32.gmra.mxu1 %v664_v19  ;;  %v247_v40 = vsel %vm231_vm7, %v230_v37, 1.0 }
 0x184   :  { %665 = vtanh.f32 %v341_v22  ;;  %v224_v23 = vsel %vm214_vm6, %v29_v17, %v656_v21  ;;  %v228_v24 = vsel %vm214_vm6, %v33_v18, %v657_v20  ;;  %v264_v41 = vsel %vm248_vm9, %v247_v40, 0.0 }
 0x185   :  { %v241_v27 = vsel %vm231_vm7, %v224_v23, 1.0  ;;  %v245_v28 = vsel %vm231_vm7, %v228_v24, 1.0 }
 0x186   :  { %v258_v15 = vsel %vm248_vm9, %v241_v27, 0.0  ;;  %v262_v29 = vsel %vm248_vm9, %v245_v28, 0.0 }
 0x187   :  { %592 = vmatmul.msk.f32.gmra.mxu0 %vm266_vm8, %v258_v15  ;;  %596 = vmatmul.msk.f32.gmra.mxu3 %vm266_vm8, %v262_v29 }
 0x18a   :  { %v666_v31 = vpop.eup %665 }
 0x18b   :  { %v344_v32 = vpop.f32.mrf.mxu0  ;;  %441 = vmatmul.f32.gmra.mxu1 %v666_v31 }
 0x18c   :  { %667 = vtanh.f32 %v344_v32 }
 0x18f   :  { %597 = vmatmul.msk.f32.gmra.mxu3 %vm266_vm8, %v263_v36 }
 0x192   :  { %v668_v38 = vpop.eup %667 }
 0x193   :  { %v347_v39 = vpop.f32.mrf.mxu0  ;;  %444 = vmatmul.f32.gmra.mxu1 %v668_v38 }
 0x194   :  { %669 = vtanh.f32 %v347_v39 }
 0x197   :  { %598 = vmatmul.msk.f32.gmra.mxu3 %vm266_vm8, %v264_v41 }
 0x19a   :  { %v670_v42 = vpop.eup %669 }
 0x19b   :  { %447 = vmatmul.f32.gmra.mxu1 %v670_v42 }
 0x1ec   :  { %v350_v43 = vpop.f32.mrf.mxu0 }
 0x1ed   :  { %671 = vtanh.f32 %v350_v43 }
 0x1f0   :  { %v433_v45 = vpop.f32.mrf.mxu1 }
 0x1f1   :  { %v434_v46 = vadd.f32 %v1016_v44, %v433_v45 }
 0x1f2   :  { %v362_v47 = vpop.f32.mrf.mxu3 }
 0x1f3   :  { %v672_v48 = vpop.eup %671  ;;  %673 = vtanh.f32 %v434_v46 }
 0x1f4   :  { %v353_v49 = vpop.f32.mrf.mxu0  ;;  %450 = vmatmul.f32.vlgmr.msra.gmra.mxu2 %v672_v48 }
 0x1f5   :  { %675 = vtanh.f32 %v353_v49 }
 0x1f8   :  { %v436_v50 = vpop.f32.mrf.mxu1 }
 0x1f9   :  { %v674_v51 = vpop.eup %673  ;;  %v437_v52 = vadd.f32 %v1016_v44, %v436_v50 }
 0x1fa   :  { %v498_v53 = vmul.f32 0.5, %v674_v51  ;;  %v365_v54 = vpop.f32.mrf.mxu3 }
 0x1fb   :  { %v676_v55 = vpop.eup %675  ;;  %677 = vtanh.f32 %v437_v52 }
 0x1fc   :  { %v514_v56 = vadd.f32 0.501, %v498_v53  ;;  %v356_v57 = vpop.f32.mrf.mxu0  ;;  %453 = vmatmul.f32.gmra.mxu2 %v676_v55 }
 0x1fd   :  { %679 = vtanh.f32 %v356_v57 }
 0x1fe   :  { %v530_v58 = vsel %vm497_vm4, %v514_v56, %v674_v51 }
 0x1ff   :  { %547 = vst.msk [vmem:[%s1136_s5] sm:$0xff] %vm546_vm5, %v530_v58 }
 0x200   :  { %v439_v59 = vpop.f32.mrf.mxu1 }
 0x201   :  { %v678_v60 = vpop.eup %677  ;;  %v440_v61 = vadd.f32 %v1016_v44, %v439_v59 }
 0x202   :  { %v499_v62 = vmul.f32 0.5, %v678_v60  ;;  %v368_v63 = vpop.f32.mrf.mxu3 }
 0x203   :  { %v680_v0 = vpop.eup %679  ;;  %681 = vtanh.f32 %v440_v61 }
 0x204   :  { %v515_v1 = vadd.f32 0.501, %v499_v62  ;;  %v359_v2 = vpop.f32.mrf.mxu0  ;;  %456 = vmatmul.f32.gmra.mxu2 %v680_v0 }
 0x205   :  { %683 = vtanh.f32 %v359_v2 }
 0x206   :  { %v531_v3 = vsel %vm497_vm4, %v515_v1, %v678_v60 }
 0x207   :  { %548 = vst.msk [vmem:[%s1136_s5 + $0x8] sm:$0xff] %vm546_vm5, %v531_v3 }
 0x208   :  { %v442_v4 = vpop.f32.mrf.mxu1 }
 0x209   :  { %v682_v5 = vpop.eup %681  ;;  %v443_v6 = vadd.f32 %v1016_v44, %v442_v4 }
 0x20a   :  { %v500_v7 = vmul.f32 0.5, %v682_v5  ;;  %v371_v8 = vpop.f32.mrf.mxu3 }
 0x20b   :  { %v684_v9 = vpop.eup %683  ;;  %685 = vtanh.f32 %v443_v6 }
 0x20c   :  { %v516_v10 = vadd.f32 0.501, %v500_v7  ;;  %687 = vtanh.f32 %v371_v8  ;;  %459 = vmatmul.f32.gmra.mxu2 %v684_v9 }
 0x20d   :  { %689 = vtanh.f32 %v362_v47 }
 0x20e   :  { %v532_v11 = vsel %vm497_vm4, %v516_v10, %v682_v5 }
 0x20f   :  { %549 = vst.msk [vmem:[%s1136_s5 + $0x10] sm:$0xff] %vm546_vm5, %v532_v11 }
 0x210   :  { %v445_v12 = vpop.f32.mrf.mxu1 }
 0x211   :  { %v686_v14 = vpop.eup %685  ;;  %v446_v16 = vadd.f32 %v1016_v44, %v445_v12 }
 0x212   :  { %v688_v17 = vpop.eup %687  ;;  %v501_v18 = vmul.f32 0.5, %v686_v14  ;;  %v374_v19 = vpop.f32.mrf.mxu3 }
 0x213   :  { %v690_v20 = vpop.eup %689  ;;  %691 = vtanh.f32 %v446_v16  ;;  %471 = vmatmul.f32.vlgmr.msrb.gmra.mxu3 %v688_v17 }
 0x214   :  { %v517_v21 = vadd.f32 0.501, %v501_v18  ;;  %693 = vtanh.f32 %v374_v19  ;;  %462 = vmatmul.f32.gmra.mxu2 %v690_v20 }
 0x215   :  { %695 = vtanh.f32 %v365_v54 }
 0x216   :  { %v533_v22 = vsel %vm497_vm4, %v517_v21, %v686_v14 }
 0x217   :  { %550 = vst.msk [vmem:[%s1136_s5 + $0x18] sm:$0xff] %vm546_vm5, %v533_v22 }
 0x218   :  { %v448_v23 = vpop.f32.mrf.mxu1 }
 0x219   :  { %v692_v24 = vpop.eup %691  ;;  %v449_v25 = vadd.f32 %v1016_v44, %v448_v23 }
 0x21a   :  { %v694_v26 = vpop.eup %693  ;;  %v502_v27 = vmul.f32 0.5, %v692_v24  ;;  %v377_v28 = vpop.f32.mrf.mxu3 }
 0x21b   :  { %v696_v15 = vpop.eup %695  ;;  %697 = vtanh.f32 %v449_v25  ;;  %474 = vmatmul.f32.gmra.mxu3 %v694_v26 }
 0x21c   :  { %v518_v29 = vadd.f32 0.501, %v502_v27  ;;  %699 = vtanh.f32 %v377_v28  ;;  %465 = vmatmul.f32.gmra.mxu2 %v696_v15 }
 0x21d   :  { %701 = vtanh.f32 %v368_v63 }
 0x21e   :  { %v534_v30 = vsel %vm497_vm4, %v518_v29, %v692_v24 }
 0x21f   :  { %551 = vst.msk [vmem:[%s1136_s5 + $0x20] sm:$0xff] %vm546_vm5, %v534_v30 }
 0x221   :  { %v698_v31 = vpop.eup %697 }
 0x222   :  { %v700_v32 = vpop.eup %699  ;;  %v503_v33 = vmul.f32 0.5, %v698_v31 }
 0x223   :  { %v702_v34 = vpop.eup %701  ;;  %477 = vmatmul.f32.gmra.mxu3 %v700_v32 }
 0x224   :  { %v519_v35 = vadd.f32 0.501, %v503_v33  ;;  %468 = vmatmul.f32.gmra.mxu2 %v702_v34 }
 0x226   :  { %v535_v36 = vsel %vm497_vm4, %v519_v35, %v698_v31 }
 0x227   :  { %552 = vst.msk [vmem:[%s1136_s5 + $0x28] sm:$0xff] %vm546_vm5, %v535_v36 }
 0x277   :  { %v451_v37 = vpop.f32.mrf.mxu2 }
 0x278   :  { %v452_v38 = vadd.f32 %v1016_v44, %v451_v37 }
 0x27a   :  { %703 = vtanh.f32 %v452_v38 }
 0x27f   :  { %v454_v39 = vpop.f32.mrf.mxu2 }
 0x280   :  { %v704_v40 = vpop.eup %703  ;;  %v455_v41 = vadd.f32 %v1016_v44, %v454_v39 }
 0x281   :  { %v504_v42 = vmul.f32 0.5, %v704_v40 }
 0x282   :  { %705 = vtanh.f32 %v455_v41 }
 0x283   :  { %v520_v43 = vadd.f32 0.501, %v504_v42 }
 0x285   :  { %v536_v45 = vsel %vm497_vm4, %v520_v43, %v704_v40 }
 0x286   :  { %553 = vst.msk [vmem:[%s1136_s5 + $0x30] sm:$0xff] %vm546_vm5, %v536_v45 }
 0x287   :  { %v457_v46 = vpop.f32.mrf.mxu2 }
 0x288   :  { %v706_v47 = vpop.eup %705  ;;  %v458_v48 = vadd.f32 %v1016_v44, %v457_v46 }
 0x289   :  { %v505_v49 = vmul.f32 0.5, %v706_v47 }
 0x28a   :  { %707 = vtanh.f32 %v458_v48 }
 0x28b   :  { %v521_v50 = vadd.f32 0.501, %v505_v49 }
 0x28d   :  { %v537_v51 = vsel %vm497_vm4, %v521_v50, %v706_v47 }
 0x28e   :  { %554 = vst.msk [vmem:[%s1136_s5 + $0x38] sm:$0xff] %vm546_vm5, %v537_v51 }
 0x28f   :  { %v460_v52 = vpop.f32.mrf.mxu2 }
 0x290   :  { %v708_v53 = vpop.eup %707  ;;  %v461_v54 = vadd.f32 %v1016_v44, %v460_v52 }
 0x291   :  { %v506_v55 = vmul.f32 0.5, %v708_v53 }
 0x292   :  { %709 = vtanh.f32 %v461_v54 }
 0x293   :  { %v522_v56 = vadd.f32 0.501, %v506_v55 }
 0x295   :  { %v538_v57 = vsel %vm497_vm4, %v522_v56, %v708_v53 }
 0x296   :  { %555 = vst.msk [vmem:[%s1136_s5 + $0x40] sm:$0xff] %vm546_vm5, %v538_v57  ;;  %v472_v58 = vpop.f32.mrf.mxu3 }
 0x297   :  { %v473_v59 = vadd.f32 %v1016_v44, %v472_v58  ;;  %v463_v60 = vpop.f32.mrf.mxu2 }
 0x298   :  { %v710_v61 = vpop.eup %709  ;;  %v464_v62 = vadd.f32 %v1016_v44, %v463_v60 }
 0x299   :  { %v507_v63 = vmul.f32 0.5, %v710_v61  ;;  %711 = vtanh.f32 %v473_v59 }
 0x29a   :  { %713 = vtanh.f32 %v464_v62 }
 0x29b   :  { %v523_v0 = vadd.f32 0.501, %v507_v63 }
 0x29d   :  { %v539_v1 = vsel %vm497_vm4, %v523_v0, %v710_v61 }
 0x29e   :  { %556 = vst.msk [vmem:[%s1136_s5 + $0x48] sm:$0xff] %vm546_vm5, %v539_v1  ;;  %v475_v2 = vpop.f32.mrf.mxu3 }
 0x29f   :  { %v712_v3 = vpop.eup %711  ;;  %v476_v4 = vadd.f32 %v1016_v44, %v475_v2  ;;  %v466_v5 = vpop.f32.mrf.mxu2 }
 0x2a0   :  { %v714_v6 = vpop.eup %713  ;;  %v511_v7 = vmul.f32 0.5, %v712_v3  ;;  %v467_v8 = vadd.f32 %v1016_v44, %v466_v5 }
 0x2a1   :  { %v508_v9 = vmul.f32 0.5, %v714_v6  ;;  %715 = vtanh.f32 %v476_v4 }
 0x2a2   :  { %v527_v10 = vadd.f32 0.501, %v511_v7  ;;  %717 = vtanh.f32 %v467_v8 }
 0x2a3   :  { %v524_v11 = vadd.f32 0.501, %v508_v9 }
 0x2a4   :  { %v543_v12 = vsel %vm497_vm4, %v527_v10, %v712_v3 }
 0x2a5   :  { %560 = vst.msk [vmem:[%s1136_s5 + $0x68] sm:$0xff] %vm546_vm5, %v543_v12  ;;  %v540_v14 = vsel %vm497_vm4, %v524_v11, %v714_v6 }
 0x2a6   :  { %557 = vst.msk [vmem:[%s1136_s5 + $0x50] sm:$0xff] %vm546_vm5, %v540_v14  ;;  %v478_v16 = vpop.f32.mrf.mxu3 }
 0x2a7   :  { %v716_v17 = vpop.eup %715  ;;  %v479_v18 = vadd.f32 %v1016_v44, %v478_v16  ;;  %v469_v19 = vpop.f32.mrf.mxu2 }
 0x2a8   :  { %v718_v20 = vpop.eup %717  ;;  %v512_v21 = vmul.f32 0.5, %v716_v17  ;;  %v470_v22 = vadd.f32 %v1016_v44, %v469_v19 }
 0x2a9   :  { %v509_v23 = vmul.f32 0.5, %v718_v20  ;;  %719 = vtanh.f32 %v479_v18 }
 0x2aa   :  { %v528_v24 = vadd.f32 0.501, %v512_v21  ;;  %721 = vtanh.f32 %v470_v22 }
 0x2ab   :  { %v525_v25 = vadd.f32 0.501, %v509_v23 }
 0x2ac   :  { %v544_v26 = vsel %vm497_vm4, %v528_v24, %v716_v17 }
 0x2ad   :  { %561 = vst.msk [vmem:[%s1136_s5 + $0x70] sm:$0xff] %vm546_vm5, %v544_v26  ;;  %v541_v27 = vsel %vm497_vm4, %v525_v25, %v718_v20 }
 0x2ae   :  { %558 = vst.msk [vmem:[%s1136_s5 + $0x58] sm:$0xff] %vm546_vm5, %v541_v27 }
 0x2af   :  { %v720_v44 = vpop.eup %719 }
 0x2b0   :  { %v722_v28 = vpop.eup %721  ;;  %v513_v15 = vmul.f32 0.5, %v720_v44 }
 0x2b1   :  { %v510_v29 = vmul.f32 0.5, %v722_v28 }
 0x2b2   :  { %v529_v30 = vadd.f32 0.501, %v513_v15 }
 0x2b3   :  { %v526_v31 = vadd.f32 0.501, %v510_v29 }
 0x2b4   :  { %v545_v32 = vsel %vm497_vm4, %v529_v30, %v720_v44 }
 0x2b5   :  { %562 = vst.msk [vmem:[%s1136_s5 + $0x78] sm:$0xff] %vm546_vm5, %v545_v32  ;;  %v542_v33 = vsel %vm497_vm4, %v526_v31, %v722_v28 }
 0x2b6   :  { %559 = vst.msk [vmem:[%s1136_s5 + $0x60] sm:$0xff] %vm546_vm5, %v542_v33 }

</bundles_post_ra>
